<compile_context>
chip_gen: v7x
topology: tpu7x:2x2x1
jax: 0.10.0
libtpu: 0.0.40
codegen_flags: <defaults>
</compile_context>

<pallas_src>
import functools

import jax
import jax.numpy as jnp
from jax.experimental import pallas as pl
from jax.experimental.pallas import tpu as pltpu


_LANES = 128
_SUBLANES = 8
# Per-tile byte budget (f32-equivalent). in+out double-buffered => ~4x this in
# pipeline buffers, plus a handful of tile-sized f32 temporaries inside the
# kernel; comfortably under the 32 MiB scoped-VMEM limit requested below.
_TARGET_TILE_BYTES = 2 * 1024 * 1024


def _round_up(n: int, m: int) -> int:
    return ((n + m - 1) // m) * m


def _seg_sum(v_f32, seg_bf16):
    """Segmented sum-broadcast of an f32 array via two single-pass bf16 matmuls.

    `seg_bf16` is a 0/1 block-diagonal matrix (exact in bf16).  Splitting v
    into bf16 hi/lo parts recovers ~f32 accuracy (rel err ~2^-16) without
    relying on precision= multi-pass lowering, and keeps MXU time well under
    the HBM time per tile on v5e/v6e/v7x.
    """
    v_hi = v_f32.astype(jnp.bfloat16)
    v_lo = (v_f32 - v_hi.astype(jnp.float32)).astype(jnp.bfloat16)
    return (jnp.dot(v_hi, seg_bf16, preferred_element_type=jnp.float32)
            + jnp.dot(v_lo, seg_bf16, preferred_element_type=jnp.float32))


def _ln_kernel_packed(x_ref, seg_ref, alpha_ref, bias_ref, o_ref, *, eps, feat):
    """Lane-packed path: pack = 128 // feat original rows share one 128-lane slab."""
    x = x_ref[...].astype(jnp.float32)            # (T, W), lane-dense
    seg = seg_ref[...]                            # (W, W) block-diag 0/1, bf16
    alpha = alpha_ref[...]                        # (1, W) f32
    bias = bias_ref[...]                          # (1, W) f32

    denom = max(feat - 1, 1)                      # torch.std: unbiased (N-1)
    mean = _seg_sum(x, seg) * (1.0 / feat)
    diff = x - mean
    var = _seg_sum(diff * diff, seg) * (1.0 / denom)
    inv = pl.reciprocal(jnp.sqrt(var) + eps, approx=True)   # EUP slot
    o_ref[...] = ((diff * inv) * alpha + bias).astype(o_ref.dtype)


def _ln_kernel_wide(x_ref, alpha_ref, bias_ref, o_ref, *, eps, feat):
    """Plain path when the feature dim is already lane-dense (or not packable)."""
    x = x_ref[...].astype(jnp.float32)            # (T, F)
    alpha = alpha_ref[...]                        # (1, F) f32
    bias = bias_ref[...]                          # (1, F) f32

    denom = max(feat - 1, 1)
    mean = jnp.mean(x, axis=-1, keepdims=True)
    diff = x - mean
    var = jnp.sum(diff * diff, axis=-1, keepdims=True) * (1.0 / denom)
    inv = pl.reciprocal(jnp.sqrt(var) + eps, approx=True)   # EUP slot
    o_ref[...] = ((diff * inv) * alpha + bias).astype(o_ref.dtype)


def layer_normalization(x, alpha, bias, eps: float = 1e-6):
    """x: (..., features); alpha, bias: (features,)"""
    orig_shape = x.shape
    feat = int(orig_shape[-1])
    x2d = x.reshape(-1, feat)
    rows = x2d.shape[0]

    # Pack several original rows into one 128-lane slab when F divides 128.
    pack = _LANES // feat if (feat < _LANES and _LANES % feat == 0) else 1
    width = feat * pack

    # Tile sizing: largest row-tile within the per-tile budget; packed rows are
    # padded (once) to tile_rows * num_tiles so no divisibility issues arise.
    packed_rows = _round_up(rows, pack) // pack
    bytes_per_row = width * 4
    max_tile_rows = max(
        _SUBLANES,
        (_TARGET_TILE_BYTES // bytes_per_row) // _SUBLANES * _SUBLANES)
    num_tiles = pl.cdiv(packed_rows, max_tile_rows)
    tile_rows = _round_up(pl.cdiv(packed_rows, num_tiles), _SUBLANES)
    padded_packed = tile_rows * num_tiles

    pad_rows = padded_packed * pack - rows
    if pad_rows:
        x2d = jnp.pad(x2d, ((0, pad_rows), (0, 0)))
    x_packed = x2d.reshape(padded_packed, width)

    alpha_row = jnp.tile(alpha.reshape(-1).astype(jnp.float32), pack).reshape(1, width)
    bias_row = jnp.tile(bias.reshape(-1).astype(jnp.float32), pack).reshape(1, width)

    itemsize = jnp.dtype(x.dtype).itemsize
    total_elems = padded_packed * width
    bytes_accessed = 2 * total_elems * itemsize + 2 * width * 4

    if pack > 1:
        # Block-diagonal "group-sum broadcast" matrix (W, W); 0/1 exact in bf16.
        seg = jnp.kron(jnp.eye(pack, dtype=jnp.float32),
                       jnp.ones((feat, feat), dtype=jnp.float32)).astype(jnp.bfloat16)
        kernel = functools.partial(_ln_kernel_packed, eps=eps, feat=feat)
        in_specs = [
            pl.BlockSpec((tile_rows, width), lambda i: (i, 0)),
            pl.BlockSpec((width, width), lambda i: (0, 0)),
            pl.BlockSpec((1, width), lambda i: (0, 0)),
            pl.BlockSpec((1, width), lambda i: (0, 0)),
        ]
        args = (x_packed, seg, alpha_row, bias_row)
        # 4 bf16 matmuls (hi/lo x two statistics) + ~12 elementwise ops/elem.
        flops = 4 * 2 * total_elems * width + 12 * total_elems
        transcendentals = 2 * total_elems
        bytes_accessed += width * width * 2
    else:
        kernel = functools.partial(_ln_kernel_wide, eps=eps, feat=feat)
        in_specs = [
            pl.BlockSpec((tile_rows, width), lambda i: (i, 0)),
            pl.BlockSpec((1, width), lambda i: (0, 0)),
            pl.BlockSpec((1, width), lambda i: (0, 0)),
        ]
        args = (x_packed, alpha_row, bias_row)
        flops = 10 * total_elems
        transcendentals = 2 * padded_packed

    out_packed = pl.pallas_call(
        kernel,
        out_shape=jax.ShapeDtypeStruct((padded_packed, width), x.dtype),
        grid_spec=pltpu.PrefetchScalarGridSpec(
            num_scalar_prefetch=0,
            grid=(num_tiles,),
            in_specs=in_specs,
            out_specs=pl.BlockSpec((tile_rows, width), lambda i: (i, 0)),
        ),
        compiler_params=pltpu.CompilerParams(
            # Rows are independent -> shard across v7x's 2 TensorCores.
            dimension_semantics=("parallel",),
            # Explicit limit: raises v5e's 16 MiB default; equals v6e/v7x default
            # and stays within v7x's 64 MiB physical VMEM.
            vmem_limit_bytes=32 * 1024 * 1024,
        ),
        cost_estimate=pl.CostEstimate(
            flops=int(flops),
            transcendentals=int(transcendentals),
            bytes_accessed=int(bytes_accessed),
        ),
    )(*args)

    out2d = out_packed.reshape(padded_packed * pack, feat)
    if pad_rows:
        out2d = out2d[:rows]
    return out2d.reshape(orig_shape)


if __name__ == "__main__":
    # Module config: LayerNormalization(features=32)
    batch, seq, features = 2, 8, 32
    eps = 1e-6

    key = jax.random.PRNGKey(0)
    x = jax.random.normal(key, (batch, seq, features), dtype=jnp.float32)

    # nn.Parameter(torch.ones(features)) / nn.Parameter(torch.zeros(features))
    alpha = jnp.ones((features,), dtype=jnp.float32)
    bias = jnp.zeros((features,), dtype=jnp.float32)

    out = layer_normalization(x, alpha, bias, eps=eps)
    out = jax.block_until_ready(out)

    # Pure-JAX reference (same math as the torch forward: unbiased std, eps on std).
    mean = jnp.mean(x, axis=-1, keepdims=True)
    diff = x - mean
    std = jnp.sqrt(jnp.sum(diff * diff, axis=-1, keepdims=True) / (features - 1))
    ref = alpha * diff / (std + eps) + bias

    # Tolerance accounts for pl.reciprocal(approx=True) (~2^-12 relative error).
    assert out.shape == ref.shape
    assert jnp.allclose(out, ref, atol=3e-3, rtol=3e-3), "mismatch vs reference"

    print("KERNEL_OK")
</pallas_src>

<mosaic_0001>
module attributes {stable_mosaic.version = 11 : i64} {
  func.func @_ln_kernel_packed(%arg0: i32, %arg1: memref<8x128xf32, #tpu.memory_space<vmem>>, %arg2: memref<128x128xbf16, #tpu.memory_space<vmem>>, %arg3: memref<1x128xf32, #tpu.memory_space<vmem>>, %arg4: memref<1x128xf32, #tpu.memory_space<vmem>>, %arg5: memref<8x128xf32, #tpu.memory_space<vmem>>) attributes {dimension_semantics = [#tpu.dimension_semantics<parallel>], iteration_bounds = array<i64: 1>, scalar_prefetch = 0 : i64, scratch_operands = 0 : i64, tpu.core_type = #tpu.core_type<tc>, window_params = [{transform_indices = @transform_0, window_bounds = array<i64: 8, 128>}, {pipeline_mode = #tpu.pipeline_mode<synchronous>, transform_indices = @transform_1, window_bounds = array<i64: 128, 128>}, {pipeline_mode = #tpu.pipeline_mode<synchronous>, transform_indices = @transform_2, window_bounds = array<i64: 1, 128>}, {pipeline_mode = #tpu.pipeline_mode<synchronous>, transform_indices = @transform_3, window_bounds = array<i64: 1, 128>}, {transform_indices = @transform_4, window_bounds = array<i64: 8, 128>}]} {
    %c0 = arith.constant 0 : index
    %c0_0 = arith.constant 0 : index
    %0 = vector.load %arg1[%c0, %c0_0] : memref<8x128xf32, #tpu.memory_space<vmem>>, vector<8x128xf32>
    %c0_1 = arith.constant 0 : index
    %c0_2 = arith.constant 0 : index
    %1 = vector.load %arg2[%c0_1, %c0_2] : memref<128x128xbf16, #tpu.memory_space<vmem>>, vector<128x128xbf16>
    %c0_3 = arith.constant 0 : index
    %c0_4 = arith.constant 0 : index
    %2 = vector.load %arg3[%c0_3, %c0_4] : memref<1x128xf32, #tpu.memory_space<vmem>>, vector<1x128xf32>
    %c0_5 = arith.constant 0 : index
    %c0_6 = arith.constant 0 : index
    %3 = vector.load %arg4[%c0_5, %c0_6] : memref<1x128xf32, #tpu.memory_space<vmem>>, vector<1x128xf32>
    %4 = arith.truncf %0 : vector<8x128xf32> to vector<8x128xbf16>
    %5 = arith.extf %4 : vector<8x128xbf16> to vector<8x128xf32>
    %6 = arith.subf %0, %5 : vector<8x128xf32>
    %7 = arith.truncf %6 : vector<8x128xf32> to vector<8x128xbf16>
    %cst = arith.constant dense<0.000000e+00> : vector<8x128xf32>
    %8 = tpu.matmul %4, %1, %cst {dimension_numbers = #tpu.dot_dimension_numbers<[1], [0], [0], [1], [0, 0, 1, 1], [], []>} : vector<8x128xbf16>, vector<128x128xbf16>, vector<8x128xf32> -> vector<8x128xf32>
    %cst_7 = arith.constant dense<0.000000e+00> : vector<8x128xf32>
    %9 = tpu.matmul %7, %1, %cst_7 {dimension_numbers = #tpu.dot_dimension_numbers<[1], [0], [0], [1], [0, 0, 1, 1], [], []>} : vector<8x128xbf16>, vector<128x128xbf16>, vector<8x128xf32> -> vector<8x128xf32>
    %10 = arith.addf %8, %9 : vector<8x128xf32>
    %cst_8 = arith.constant 3.125000e-02 : f32
    %11 = vector.broadcast %cst_8 : f32 to vector<8x128xf32>
    %12 = arith.mulf %10, %11 : vector<8x128xf32>
    %13 = arith.subf %0, %12 : vector<8x128xf32>
    %14 = arith.mulf %13, %13 : vector<8x128xf32>
    %15 = arith.truncf %14 : vector<8x128xf32> to vector<8x128xbf16>
    %16 = arith.extf %15 : vector<8x128xbf16> to vector<8x128xf32>
    %17 = arith.subf %14, %16 : vector<8x128xf32>
    %18 = arith.truncf %17 : vector<8x128xf32> to vector<8x128xbf16>
    %cst_9 = arith.constant dense<0.000000e+00> : vector<8x128xf32>
    %19 = tpu.matmul %15, %1, %cst_9 {dimension_numbers = #tpu.dot_dimension_numbers<[1], [0], [0], [1], [0, 0, 1, 1], [], []>} : vector<8x128xbf16>, vector<128x128xbf16>, vector<8x128xf32> -> vector<8x128xf32>
    %cst_10 = arith.constant dense<0.000000e+00> : vector<8x128xf32>
    %20 = tpu.matmul %18, %1, %cst_10 {dimension_numbers = #tpu.dot_dimension_numbers<[1], [0], [0], [1], [0, 0, 1, 1], [], []>} : vector<8x128xbf16>, vector<128x128xbf16>, vector<8x128xf32> -> vector<8x128xf32>
    %21 = arith.addf %19, %20 : vector<8x128xf32>
    %cst_11 = arith.constant 0.0322580636 : f32
    %22 = vector.broadcast %cst_11 : f32 to vector<8x128xf32>
    %23 = arith.mulf %21, %22 : vector<8x128xf32>
    %24 = math.sqrt %23 : vector<8x128xf32>
    %cst_12 = arith.constant 9.99999997E-7 : f32
    %25 = vector.broadcast %cst_12 : f32 to vector<8x128xf32>
    %26 = arith.addf %24, %25 : vector<8x128xf32>
    %27 = tpu.reciprocal %26 {approx = true} : vector<8x128xf32> -> vector<8x128xf32>
    %28 = arith.mulf %13, %27 : vector<8x128xf32>
    %29 = vector.broadcast %2 : vector<1x128xf32> to vector<8x128xf32>
    %30 = arith.mulf %28, %29 : vector<8x128xf32>
    %31 = vector.broadcast %3 : vector<1x128xf32> to vector<8x128xf32>
    %32 = arith.addf %30, %31 : vector<8x128xf32>
    %c0_13 = arith.constant 0 : index
    %c0_14 = arith.constant 0 : index
    %33 = vector.load %arg5[%c0_13, %c0_14] : memref<8x128xf32, #tpu.memory_space<vmem>>, vector<8x128xf32>
    tpu.vector_store %arg5[%c0_13, %c0_14], %32 {strides = array<i32>} : memref<8x128xf32, #tpu.memory_space<vmem>>, vector<8x128xf32>,
    return
  }
  func.func @transform_0(%arg0: i32) -> (i32, i32) {
    %c0_i32 = arith.constant 0 : i32
    %c0_i32_0 = arith.constant 0 : i32
    return %arg0, %c0_i32 : i32, i32
  }
  func.func @transform_1(%arg0: i32) -> (i32, i32) {
    %c0_i32 = arith.constant 0 : i32
    %c0_i32_0 = arith.constant 0 : i32
    %c0_i32_1 = arith.constant 0 : i32
    return %c0_i32, %c0_i32_0 : i32, i32
  }
  func.func @transform_2(%arg0: i32) -> (i32, i32) {
    %c0_i32 = arith.constant 0 : i32
    %c0_i32_0 = arith.constant 0 : i32
    %c0_i32_1 = arith.constant 0 : i32
    return %c0_i32, %c0_i32_0 : i32, i32
  }
  func.func @transform_3(%arg0: i32) -> (i32, i32) {
    %c0_i32 = arith.constant 0 : i32
    %c0_i32_0 = arith.constant 0 : i32
    %c0_i32_1 = arith.constant 0 : i32
    return %c0_i32, %c0_i32_0 : i32, i32
  }
  func.func @transform_4(%arg0: i32) -> (i32, i32) {
    %c0_i32 = arith.constant 0 : i32
    %c0_i32_0 = arith.constant 0 : i32
    return %arg0, %c0_i32 : i32, i32
  }
}

</mosaic_0001>

<bundles_post_ra>
// kernel: tpu_custom_call.1
= control target key start
LH: loop header
LB: loop body
LE: loop exit
PB: predicated region body
PF: predicated region fallthrough
CT: control target
= control target key end

     0   :  { %9 = vsyncpa [#allocation3], 0  ;;  %s701_s0 = inlined_call_operand.hbm [shape: f32[8,128], index: 0, kind: input, shape index: {}]   ;;  %s702_s1 = inlined_call_operand.hbm [shape: bf16[128,128], index: 1, kind: input, shape index: {}]   ;;  %s703_s2 = inlined_call_operand.vmem [shape: f32[1,128], index: 2, kind: input, shape index: {}]   ;;  %s704_s3 = inlined_call_operand.vmem [shape: f32[1,128], index: 3, kind: input, shape index: {}]   ;;  %s705_s4 = inlined_call_operand.hbm [shape: f32[8,128], index: 4, kind: output, shape index: {}]  }
   0x1   :  { %10 = vsyncpa [#allocation6], 0 }
   0x2   :  { %11 = vsyncpa [#allocation4], 0  ;;  %s550_s15 = smov [#allocation2]   ;;  %s551_s17 = smov [#allocation5]  }
   0x3   :  { %s18_s16 = sshll.u32 %s550_s15, 4  ;;  %s27_s18 = sshll.u32 %s551_s17, 4  ;;  %s19_s16 = int_to_ptr.vmem [resolvable:$true] %s18_s16  ;;  %s582_s18 = int_to_ptr.vmem [resolvable:$true] %s27_s18 }
   0x4   :  { %s478_s21 = scalar_lea.hbm %s701_s0, 128 }
   0x5   :  { %p479_p0 = scmp.ne.s32.totalorder %s701_s0, %s478_s21  ;;  %p482_p1 = scmp.lt.u32.totalorder %s478_s21, %s701_s0 }
   0x7   :  { %p484_p2 = pnand %p482_p1, %p479_p0 }
   0x9   :  { %487 = shalt.err (!%p484_p2)
}
   0xa   :  { %s488_s26 = scalar_lea.vmem %s19_s16, 128  ;;  %p493_p4 = scmp.lt.s32.totalorder %s19_s16, %s19_s16 }
   0xb   :  { %p489_p3 = scmp.ne.s32.totalorder %s19_s16, %s488_s26  ;;  %p494_p5 = scmp.lt.s32.totalorder %s488_s26, %s488_s26 }
   0xd   :  { %p495_p6 = por %p494_p5, %p493_p4 }
   0xf   :  { %p496_p7 = pnand %p495_p6, %p489_p3 }
  0x11   :  { %499 = shalt.err (!%p496_p7)
}
  0x12   :  { %21 = dma.hbm_to_vmem [thread:$0]  %s701_s0, 128, %s19_s16, [#allocation3]  }
  0x13   :  { %s500_s5 = scalar_lea.hbm %s702_s1, 1024 }
  0x14   :  { %p501_p8 = scmp.ne.s32.totalorder %s702_s1, %s500_s5  ;;  %p504_p9 = scmp.lt.u32.totalorder %s500_s5, %s702_s1 }
  0x16   :  { %p506_p10 = pnand %p504_p9, %p501_p8 }
  0x18   :  { %509 = shalt.err (!%p506_p10)
}
  0x19   :  { %s510_s10 = scalar_lea.vmem %s582_s18, 1024  ;;  %p515_p12 = scmp.lt.s32.totalorder %s582_s18, %s582_s18 }
  0x1a   :  { %p511_p11 = scmp.ne.s32.totalorder %s582_s18, %s510_s10  ;;  %p516_p13 = scmp.lt.s32.totalorder %s510_s10, %s510_s10 }
  0x1c   :  { %p517_p0 = por %p516_p13, %p515_p12 }
  0x1e   :  { %p518_p1 = pnand %p517_p0, %p511_p11 }
  0x20   :  { %521 = shalt.err (!%p518_p1)
}
  0x21   :  { %s552_s0 = smov 64   ;;  %s553_s11 = smov 4  }
  0x22   :  { %33 = dma.hbm_to_vmem [thread:$0]  %s702_s1, 1024, %s582_s18, [#allocation6], %s552_s0, %s552_s0, %s553_s11  }
  0x23   :  { %544 = dma.done.wait [#allocation3], 128  }
  0x24   :  { %545 = vsyncadd [#allocation3], 4294967168 }
  0x25   :  { %546 = dma.done.wait [#allocation6], 1024  }
  0x26   :  { %547 = vsyncadd [#allocation6], 4294966272  ;;  %v554_v0 = vmov 0.0   ;;  %vm555_vm0 = vmmov 0   ;;  %v619_v1 = vld [vmem:[#allocation5] sm:$0xff]   ;;  %v622_v2 = vld [vmem:[#allocation5 + $0x8] sm:$0xff]  }
  0x27   :  { %371 = vmatprep.subr.bf16.mxu0 %v554_v0  ;;  %387 = vmatprep.mubr.msk.bf16.mxu0 %vm555_vm0, %v554_v0  ;;  %v628_v3 = vld [vmem:[#allocation5 + $0x10] sm:$0xff]   ;;  %v634_v4 = vld [vmem:[#allocation5 + $0x18] sm:$0xff]   ;;  %v640_v5 = vld [vmem:[#allocation5 + $0x20] sm:$0xff]   ;;  %s556_s17 = smov [#allocation7]  }
  0x28   :  { %411 = vmatprep.subr.bf16.mxu1 %v554_v0  ;;  %427 = vmatprep.mubr.msk.bf16.mxu1 %vm555_vm0, %v554_v0  ;;  %v45_v6 = vld [vmem:[#allocation2] sm:$0xff]  ;;  %v471_v8 = vld [vmem:[#allocation5 + $0x28] sm:$0xff]   ;;  %v472_v10 = vld [vmem:[#allocation5 + $0x30] sm:$0xff]   ;;  %s315_s18 = sshll.u32 %s556_s17, 4  ;;  %s316_s18 = int_to_ptr.vmem [resolvable:$true] %s315_s18 }
  0x29   :  { %372 = vmatpush3.bf16.msra.mxu0 %v619_v1  ;;  %412 = vmatpush3.bf16.msra.mxu1 %v619_v1  ;;  %v64_v7 = vpack.c.bf16 %v45_v6, %v45_v6  ;;  %v473_v12 = vld [vmem:[#allocation5 + $0x38] sm:$0xff]   ;;  %s522_s19 = scalar_lea.vmem %s316_s18, 128  ;;  %p527_p3 = scmp.lt.s32.totalorder %s316_s18, %s316_s18 }
  0x2a   :  { %373 = vmatprep.subr.bf16.mxu0 %v554_v0  ;;  %413 = vmatprep.subr.bf16.mxu1 %v554_v0  ;;  %v333_v37 = vld [vmem:[%s703_s2] ss:$0 sm:$0xff]  ;;  %p523_p2 = scmp.ne.s32.totalorder %s316_s18, %s522_s19  ;;  %p528_p4 = scmp.lt.s32.totalorder %s522_s19, %s522_s19 }
  0x2b   :  { %v65_v9 = vunpack.c.l.bf16 %v64_v7  ;;  %v334_v39 = vld [vmem:[%s704_s3] ss:$0 sm:$0xff] }
  0x2c   :  { %p529_p5 = por %p528_p4, %p527_p3 }
  0x2d   :  { %374 = vmatpush3.bf16.msra.mxu0 %v622_v2  ;;  %414 = vmatpush3.bf16.msra.mxu1 %v622_v2  ;;  %v66_v11 = vsub.f32 %v45_v6, %v65_v9 }
  0x2e   :  { %375 = vmatprep.subr.bf16.mxu0 %v554_v0  ;;  %415 = vmatprep.subr.bf16.mxu1 %v554_v0  ;;  %p530_p6 = pnand %p529_p5, %p523_p2 }
  0x2f   :  { %v67_v13 = vpack.c.bf16 %v66_v11, %v66_v11 }
  0x31   :  { %376 = vmatpush3.bf16.msra.mxu0 %v628_v3  ;;  %416 = vmatpush3.bf16.msra.mxu1 %v628_v3 }
  0x32   :  { %377 = vmatprep.subr.bf16.mxu0 %v554_v0  ;;  %417 = vmatprep.subr.bf16.mxu1 %v554_v0 }
  0x35   :  { %378 = vmatpush3.bf16.msra.mxu0 %v634_v4  ;;  %418 = vmatpush3.bf16.msra.mxu1 %v634_v4 }
  0x36   :  { %379 = vmatprep.subr.bf16.mxu0 %v554_v0  ;;  %419 = vmatprep.subr.bf16.mxu1 %v554_v0 }
  0x39   :  { %380 = vmatpush3.bf16.msra.mxu0 %v640_v5  ;;  %420 = vmatpush3.bf16.msra.mxu1 %v640_v5 }
  0x3a   :  { %381 = vmatprep.subr.bf16.mxu0 %v554_v0  ;;  %421 = vmatprep.subr.bf16.mxu1 %v554_v0 }
  0x3d   :  { %382 = vmatpush3.bf16.msra.mxu0 %v471_v8  ;;  %422 = vmatpush3.bf16.msra.mxu1 %v471_v8 }
  0x3e   :  { %383 = vmatprep.subr.bf16.mxu0 %v554_v0  ;;  %423 = vmatprep.subr.bf16.mxu1 %v554_v0 }
  0x41   :  { %384 = vmatpush3.bf16.msra.mxu0 %v472_v10  ;;  %424 = vmatpush3.bf16.msra.mxu1 %v472_v10 }
  0x42   :  { %385 = vmatprep.subr.bf16.mxu0 %v554_v0  ;;  %425 = vmatprep.subr.bf16.mxu1 %v554_v0 }
  0x45   :  { %386 = vmatpush3.bf16.msra.mxu0 %v473_v12  ;;  %426 = vmatpush3.bf16.msra.mxu1 %v473_v12 }
  0x46   :  { %391 = vmatprep.subr.bf16.mxu0 %v554_v0  ;;  %431 = vmatprep.subr.bf16.mxu1 %v554_v0 }
  0x48   :  { %388 = vmatmul.mubr.bf16.vlgmr.msra.gmra.mrb[0].mxu0 %v67_v13 }
  0x49   :  { %392 = vmatpush3.bf16.msra.mxu0 %v619_v1  ;;  %407 = vmatprep.mubr.msk.bf16.mxu0 %vm555_vm0, %v554_v0 }
  0x4a   :  { %393 = vmatprep.subr.bf16.mxu0 %v554_v0 }
  0x4d   :  { %394 = vmatpush3.bf16.msra.mxu0 %v622_v2 }
  0x4e   :  { %395 = vmatprep.subr.bf16.mxu0 %v554_v0 }
  0x51   :  { %396 = vmatpush3.bf16.msra.mxu0 %v628_v3 }
  0x52   :  { %397 = vmatprep.subr.bf16.mxu0 %v554_v0 }
  0x55   :  { %398 = vmatpush3.bf16.msra.mxu0 %v634_v4 }
  0x56   :  { %399 = vmatprep.subr.bf16.mxu0 %v554_v0 }
  0x59   :  { %400 = vmatpush3.bf16.msra.mxu0 %v640_v5 }
  0x5a   :  { %401 = vmatprep.subr.bf16.mxu0 %v554_v0 }
  0x5d   :  { %402 = vmatpush3.bf16.msra.mxu0 %v471_v8 }
  0x5e   :  { %403 = vmatprep.subr.bf16.mxu0 %v554_v0 }
  0x61   :  { %404 = vmatpush3.bf16.msra.mxu0 %v472_v10 }
  0x62   :  { %405 = vmatprep.subr.bf16.mxu0 %v554_v0 }
  0x65   :  { %406 = vmatpush3.bf16.msra.mxu0 %v473_v12 }
  0x68   :  { %408 = vmatmul.mubr.bf16.vlgmr.msra.gmra.mrb[0].mxu0 %v64_v7 }
 0x13b   :  { %v190_v14 = vpop.f32.mrb[0].mxu0 }
 0x13c   :  { %v196_v15 = vmul.f32 0.03125, %v190_v14  ;;  %v409_v16 = vpop.f32.mrb[1].mxu0 }
 0x13d   :  { %v193_v17 = vpop.f32.mrb[2].mxu0 }
 0x13e   :  { %v197_v18 = vsub.f32 %v45_v6, %v196_v15  ;;  %v410_v19 = vpop.f32.mrb[3].mxu0 }
 0x140   :  { %v198_v20 = vmul.f32 %v197_v18, %v197_v18 }
 0x142   :  { %v199_v21 = vpack.c.bf16 %v198_v20, %v198_v20 }
 0x144   :  { %v200_v22 = vunpack.c.l.bf16 %v199_v21 }
 0x146   :  { %v201_v23 = vsub.f32 %v198_v20, %v200_v22 }
 0x148   :  { %v202_v24 = vpack.c.bf16 %v201_v23, %v201_v23 }
 0x14a   :  { %428 = vmatmul.mubr.bf16.vlgmr.msra.gmra.mrb[0].mxu1 %v202_v24 }
 0x14b   :  { %432 = vmatpush3.bf16.msra.mxu1 %v619_v1  ;;  %447 = vmatprep.mubr.msk.bf16.mxu1 %vm555_vm0, %v554_v0 }
 0x14c   :  { %433 = vmatprep.subr.bf16.mxu1 %v554_v0 }
 0x14f   :  { %434 = vmatpush3.bf16.msra.mxu1 %v622_v2 }
 0x150   :  { %435 = vmatprep.subr.bf16.mxu1 %v554_v0 }
 0x153   :  { %436 = vmatpush3.bf16.msra.mxu1 %v628_v3 }
 0x154   :  { %437 = vmatprep.subr.bf16.mxu1 %v554_v0 }
 0x157   :  { %438 = vmatpush3.bf16.msra.mxu1 %v634_v4 }
 0x158   :  { %439 = vmatprep.subr.bf16.mxu1 %v554_v0 }
 0x15b   :  { %440 = vmatpush3.bf16.msra.mxu1 %v640_v5 }
 0x15c   :  { %441 = vmatprep.subr.bf16.mxu1 %v554_v0 }
 0x15f   :  { %442 = vmatpush3.bf16.msra.mxu1 %v471_v8 }
 0x160   :  { %443 = vmatprep.subr.bf16.mxu1 %v554_v0 }
 0x163   :  { %444 = vmatpush3.bf16.msra.mxu1 %v472_v10 }
 0x164   :  { %445 = vmatprep.subr.bf16.mxu1 %v554_v0 }
 0x167   :  { %446 = vmatpush3.bf16.msra.mxu1 %v473_v12 }
 0x16a   :  { %448 = vmatmul.mubr.bf16.vlgmr.msra.gmra.mrb[0].mxu1 %v199_v21 }
 0x23d   :  { %v277_v25 = vpop.f32.mrb[0].mxu1 }
 0x23e   :  { %v283_v26 = vmul.f32 0.032258064, %v277_v25  ;;  %v449_v27 = vpop.f32.mrb[1].mxu1 }
 0x23f   :  { %v280_v28 = vpop.f32.mrb[2].mxu1 }
 0x240   :  { %474 = vrsqrt.f32 %v283_v26  ;;  %v450_v29 = vpop.f32.mrb[3].mxu1  ;;  %vm286_vm1 = vcmp.eq.f32.partialorder %v283_v26, inf  ;;  %v289_v32 = vand.u32 2147483648, %v283_v26  ;;  %vm288_vm2 = vcmp.eq.f32.partialorder %v283_v26, 0.0 }
 0x24a   :  { %v475_v30 = vpop.eup %474 }
 0x24b   :  { %v285_v31 = vmul.f32 %v475_v30, %v283_v26 }
 0x24d   :  { %v287_v33 = vsel %vm286_vm1, %v283_v26, %v285_v31 }
 0x24e   :  { %v290_v34 = vsel %vm288_vm2, %v289_v32, %v287_v33 }
 0x24f   :  { %v291_v35 = vadd.f32 1e-06, %v290_v34 }
 0x251   :  { %476 = vrcp.f32 %v291_v35 }
 0x25b   :  { %v477_v36 = vpop.eup %476 }
 0x25c   :  { %v293_v38 = vmul.f32 %v477_v36, %v197_v18 }
 0x25e   :  { %v300_v40 = vmul.f32 %v333_v37, %v293_v38 }
 0x260   :  { %v307_v41 = vadd.f32 %v334_v39, %v300_v40 }
 0x262   :  { %308 = vst [vmem:[#allocation7] sm:$0xff] %v307_v41 }
 0x263   :  { %533 = shalt.err (!%p530_p6)
}
 0x264   :  { %s534_s21 = scalar_lea.hbm %s705_s4, 128 }
 0x265   :  { %p535_p7 = scmp.ne.s32.totalorder %s705_s4, %s534_s21  ;;  %p538_p8 = scmp.lt.u32.totalorder %s534_s21, %s705_s4 }
 0x267   :  { %p540_p9 = pnand %p538_p8, %p535_p7 }
 0x269   :  { %543 = shalt.err (!%p540_p9)
}
 0x26a   :  { %318 = dma.vmem_to_hbm [thread:$0]  %s316_s18, 128, %s705_s4, [#allocation4]  }
 0x26b   :  { %548 = dma.done.wait [#allocation4], 128  }
 0x26c   :  { %549 = vsyncadd [#allocation4], 4294967168 }
 0x26d   :  { %322 = vsyncpa [#allocation3], 1 }
 0x26e   :  { %323 = vsyncpa [#allocation6], 1 }
 0x26f   :  { %324 = vsyncpa [#allocation4], 1 }

</bundles_post_ra>
